<compile_context>
chip_gen: v7x
topology: tpu7x:2x2x1
jax: 0.10.0
libtpu: 0.0.40
codegen_flags: <defaults>
</compile_context>

<pallas_src>
import functools

import jax
import jax.numpy as jnp
from jax import lax
from jax.experimental import pallas as pl
from jax.experimental.pallas import tpu as pltpu


def _attention_kernel(x_ref, wqkv_ref, bqkv_ref, wproj_ref, bproj_ref, o_ref,
                      *, num_heads: int, head_dim: int, scale: float):
    # x_ref:     (1, N, C)   one batch element (f32)
    # wqkv_ref:  (C, 3C)     bf16, resident
    # bqkv_ref:  (1, 3C)     f32, resident
    # wproj_ref: (C, C)      bf16, resident
    # bproj_ref: (1, C)      f32, resident
    # o_ref:     (1, N, C)
    N = x_ref.shape[1]
    C = num_heads * head_dim

    # ---- QKV projection: one full-width MXU matmul, bf16 in, f32 accumulate ----
    x = x_ref[0].astype(jnp.bfloat16)                               # (N, C)
    qkv = jnp.dot(x, wqkv_ref[...],
                  preferred_element_type=jnp.float32)               # (N, 3C) f32
    qkv = qkv + bqkv_ref[...]                                       # bias broadcast

    # Lane-dense C-wide slices (W_qkv channel order is [s, h, d]).
    q = qkv[:, 0 * C:1 * C]                                         # (N, C)
    k = qkv[:, 1 * C:2 * C]
    v = qkv[:, 2 * C:3 * C]

    # Fold softmax scale into q: O(N*C) VPU work instead of O(H*N^2).
    q = q * scale

    # Head-major (H, N, Dh) layout -> one batched matmul over all heads.
    def to_heads(t):
        return jnp.transpose(t.reshape(N, num_heads, head_dim), (1, 0, 2))

    qh = to_heads(q).astype(jnp.bfloat16)                           # (H, N, Dh)
    kh = to_heads(k).astype(jnp.bfloat16)
    vh = to_heads(v).astype(jnp.bfloat16)

    # ---- Scores for all heads at once: (H, N, N), f32 accumulation ----
    s = jnp.einsum('hqd,hkd->hqk', qh, kh,
                   preferred_element_type=jnp.float32)

    # Numerically stable softmax (f32 elementwise; divide on the EUP).
    s = s - jnp.max(s, axis=-1, keepdims=True)
    p = jnp.exp(s)
    l = jnp.sum(p, axis=-1, keepdims=True)
    p = p * pl.reciprocal(l, approx=True)

    # ---- Attention output for all heads: (H, N, Dh), bf16 in / f32 accum ----
    oh = jnp.einsum('hqk,hkd->hqd', p.astype(jnp.bfloat16), vh,
                    preferred_element_type=jnp.float32)

    # ---- Merge heads to a lane-dense (N, C) slab and project ----
    y = jnp.transpose(oh, (1, 0, 2)).reshape(N, C).astype(jnp.bfloat16)
    y = jnp.dot(y, wproj_ref[...], preferred_element_type=jnp.float32)
    y = y + bproj_ref[...]
    o_ref[0] = y.astype(o_ref.dtype)


def attention_forward(x, w_qkv, b_qkv, w_proj, b_proj, *, num_heads: int):
    """Fused multi-head self-attention forward (inference, no mask/dropout)."""
    B, N, C = x.shape
    assert C % num_heads == 0, "dim should be divisible by num_heads"
    head_dim = C // num_heads
    scale = head_dim ** -0.5
    assert w_qkv.shape == (C, 3 * C)
    assert b_qkv.shape == (1, 3 * C)
    assert w_proj.shape == (C, C)
    assert b_proj.shape == (1, C)

    # bf16 weights feed the MXU natively and halve resident weight VMEM / DMA.
    w_qkv_bf = w_qkv.astype(jnp.bfloat16)
    w_proj_bf = w_proj.astype(jnp.bfloat16)
    b_qkv_f32 = b_qkv.astype(jnp.float32)
    b_proj_f32 = b_proj.astype(jnp.float32)

    kernel = functools.partial(
        _attention_kernel, num_heads=num_heads, head_dim=head_dim, scale=scale)

    flops = (2 * B * N * C * (3 * C)                       # qkv projection
             + 4 * B * num_heads * N * N * head_dim        # q@k^T + p@v
             + 2 * B * N * C * C)                          # output projection
    bytes_accessed = (x.size * x.dtype.itemsize            # x read
                      + w_qkv_bf.size * 2 + w_proj_bf.size * 2
                      + b_qkv_f32.size * 4 + b_proj_f32.size * 4
                      + B * N * C * x.dtype.itemsize)      # out write
    cost = pl.CostEstimate(flops=flops,
                           transcendentals=B * num_heads * N * N,
                           bytes_accessed=bytes_accessed)

    return pl.pallas_call(
        kernel,
        out_shape=jax.ShapeDtypeStruct((B, N, C), x.dtype),
        grid_spec=pltpu.PrefetchScalarGridSpec(
            num_scalar_prefetch=0,
            grid=(B,),
            in_specs=[
                pl.BlockSpec((1, N, C), lambda b: (b, 0, 0)),    # x: one batch / step
                pl.BlockSpec((C, 3 * C), lambda b: (0, 0)),      # W_qkv (resident)
                pl.BlockSpec((1, 3 * C), lambda b: (0, 0)),      # b_qkv (resident)
                pl.BlockSpec((C, C), lambda b: (0, 0)),          # W_proj (resident)
                pl.BlockSpec((1, C), lambda b: (0, 0)),          # b_proj (resident)
            ],
            out_specs=pl.BlockSpec((1, N, C), lambda b: (b, 0, 0)),
        ),
        compiler_params=pltpu.CompilerParams(
            dimension_semantics=("parallel",),
            vmem_limit_bytes=32 * 1024 * 1024,
        ),
        cost_estimate=cost,
    )(x, w_qkv_bf, b_qkv_f32, w_proj_bf, b_proj_f32)


def attention_reference(x, w_qkv, b_qkv, w_proj, b_proj, *, num_heads: int):
    """Plain-JAX f32 reference matching the PyTorch module forward."""
    B, N, C = x.shape
    Dh = C // num_heads
    scale = Dh ** -0.5
    qkv = jnp.dot(x, w_qkv, precision=lax.Precision.HIGHEST) + b_qkv[0]
    qkv = qkv.reshape(B, N, 3, num_heads, Dh).transpose(2, 0, 3, 1, 4)
    q, k, v = qkv[0], qkv[1], qkv[2]                    # (B, H, N, Dh)
    s = jnp.einsum("bhnd,bhmd->bhnm", q, k,
                   precision=lax.Precision.HIGHEST) * scale
    s = s - jnp.max(s, axis=-1, keepdims=True)
    p = jnp.exp(s)
    p = p / jnp.sum(p, axis=-1, keepdims=True)
    o = jnp.einsum("bhnm,bhmd->bhnd", p, v, precision=lax.Precision.HIGHEST)
    o = o.transpose(0, 2, 1, 3).reshape(B, N, C)
    return jnp.dot(o, w_proj, precision=lax.Precision.HIGHEST) + b_proj[0]


if __name__ == "__main__":
    # Module config: Attention(dim=32, num_heads=8, qkv_bias=False) at inference.
    B, N, C = 2, 8, 32
    num_heads = 8                      # head_dim = 4

    key = jax.random.PRNGKey(0)
    k0, k1, k2, k3 = jax.random.split(key, 4)
    x = jax.random.normal(k0, (B, N, C), dtype=jnp.float32)
    w_qkv = jax.random.normal(k1, (C, 3 * C), dtype=jnp.float32) * (C ** -0.5)
    b_qkv = jnp.zeros((1, 3 * C), dtype=jnp.float32)          # qkv_bias=False
    w_proj = jax.random.normal(k2, (C, C), dtype=jnp.float32) * (C ** -0.5)
    b_proj = jax.random.normal(k3, (1, C), dtype=jnp.float32) * 0.02

    out = attention_forward(x, w_qkv, b_qkv, w_proj, b_proj, num_heads=num_heads)
    out = jax.block_until_ready(out)

    ref = attention_reference(x, w_qkv, b_qkv, w_proj, b_proj, num_heads=num_heads)

    assert out.shape == x.shape
    assert out.dtype == x.dtype
    # Tolerance reflects the native bf16 MXU path (f32 accumulation) + approx
    # reciprocal, compared against a full-f32 HIGHEST-precision reference.
    max_err = float(jnp.max(jnp.abs(out - ref)))
    assert jnp.allclose(out, ref, atol=1e-1, rtol=1e-1), f"max abs err {max_err}"

    print("KERNEL_OK")
</pallas_src>

<mosaic_0001>
module attributes {stable_mosaic.version = 11 : i64} {
  func.func @_attention_kernel(%arg0: i32, %arg1: memref<1x8x32xf32, #tpu.memory_space<vmem>>, %arg2: memref<32x96xbf16, #tpu.memory_space<vmem>>, %arg3: memref<1x96xf32, #tpu.memory_space<vmem>>, %arg4: memref<32x32xbf16, #tpu.memory_space<vmem>>, %arg5: memref<1x32xf32, #tpu.memory_space<vmem>>, %arg6: memref<1x8x32xf32, #tpu.memory_space<vmem>>) attributes {dimension_semantics = [#tpu.dimension_semantics<parallel>], iteration_bounds = array<i64: 2>, scalar_prefetch = 0 : i64, scratch_operands = 0 : i64, tpu.core_type = #tpu.core_type<tc>, window_params = [{transform_indices = @transform_0, window_bounds = array<i64: 1, 8, 32>}, {pipeline_mode = #tpu.pipeline_mode<synchronous>, transform_indices = @transform_1, window_bounds = array<i64: 32, 96>}, {pipeline_mode = #tpu.pipeline_mode<synchronous>, transform_indices = @transform_2, window_bounds = array<i64: 1, 96>}, {pipeline_mode = #tpu.pipeline_mode<synchronous>, transform_indices = @transform_3, window_bounds = array<i64: 32, 32>}, {pipeline_mode = #tpu.pipeline_mode<synchronous>, transform_indices = @transform_4, window_bounds = array<i64: 1, 32>}, {transform_indices = @transform_5, window_bounds = array<i64: 1, 8, 32>}]} {
    %c0 = arith.constant 0 : index
    %c0_0 = arith.constant 0 : index
    %c0_1 = arith.constant 0 : index
    %0 = vector.load %arg1[%c0, %c0_0, %c0_1] : memref<1x8x32xf32, #tpu.memory_space<vmem>>, vector<1x8x32xf32>
    %1 = vector.shape_cast %0 : vector<1x8x32xf32> to vector<8x32xf32>
    %2 = arith.truncf %1 : vector<8x32xf32> to vector<8x32xbf16>
    %c0_2 = arith.constant 0 : index
    %c0_3 = arith.constant 0 : index
    %3 = vector.load %arg2[%c0_2, %c0_3] : memref<32x96xbf16, #tpu.memory_space<vmem>>, vector<32x96xbf16>
    %cst = arith.constant dense<0.000000e+00> : vector<8x96xf32>
    %4 = tpu.matmul %2, %3, %cst {dimension_numbers = #tpu.dot_dimension_numbers<[1], [0], [0], [1], [0, 0, 1, 1], [], []>} : vector<8x32xbf16>, vector<32x96xbf16>, vector<8x96xf32> -> vector<8x96xf32>
    %c0_4 = arith.constant 0 : index
    %c0_5 = arith.constant 0 : index
    %5 = vector.load %arg3[%c0_4, %c0_5] : memref<1x96xf32, #tpu.memory_space<vmem>>, vector<1x96xf32>
    %6 = vector.broadcast %5 : vector<1x96xf32> to vector<8x96xf32>
    %7 = arith.addf %4, %6 : vector<8x96xf32>
    %8 = vector.extract_strided_slice %7 {offsets = [0, 0], sizes = [8, 32], strides = [1, 1]} : vector<8x96xf32> to vector<8x32xf32>
    %9 = vector.extract_strided_slice %7 {offsets = [0, 32], sizes = [8, 32], strides = [1, 1]} : vector<8x96xf32> to vector<8x32xf32>
    %10 = vector.extract_strided_slice %7 {offsets = [0, 64], sizes = [8, 32], strides = [1, 1]} : vector<8x96xf32> to vector<8x32xf32>
    %cst_6 = arith.constant 5.000000e-01 : f32
    %11 = vector.broadcast %cst_6 : f32 to vector<8x32xf32>
    %12 = arith.mulf %8, %11 : vector<8x32xf32>
    %13 = vector.shape_cast %12 : vector<8x32xf32> to vector<8x8x4xf32>
    %14 = tpu.transpose %13, [1, 0, 2] : vector<8x8x4xf32> -> vector<8x8x4xf32>
    %15 = arith.truncf %14 : vector<8x8x4xf32> to vector<8x8x4xbf16>
    %16 = vector.shape_cast %9 : vector<8x32xf32> to vector<8x8x4xf32>
    %17 = tpu.transpose %16, [1, 0, 2] : vector<8x8x4xf32> -> vector<8x8x4xf32>
    %18 = arith.truncf %17 : vector<8x8x4xf32> to vector<8x8x4xbf16>
    %19 = vector.shape_cast %10 : vector<8x32xf32> to vector<8x8x4xf32>
    %20 = tpu.transpose %19, [1, 0, 2] : vector<8x8x4xf32> -> vector<8x8x4xf32>
    %21 = arith.truncf %20 : vector<8x8x4xf32> to vector<8x8x4xbf16>
    "tpu.trace_start"() <{level = 10 : i32, message = "hqd,hkd->hqk"}> : () -> ()
    %cst_7 = arith.constant dense<0.000000e+00> : vector<8x8x8xf32>
    %22 = tpu.matmul %15, %18, %cst_7 {dimension_numbers = #tpu.dot_dimension_numbers<[2], [2], [1], [1], [0, 0, 0, 1, 1, 1], [0], [0]>} : vector<8x8x4xbf16>, vector<8x8x4xbf16>, vector<8x8x8xf32> -> vector<8x8x8xf32>
    "tpu.trace_stop"() : () -> ()
    %cst_8 = arith.constant dense<0xFF800000> : vector<8x8xf32>
    %23 = vector.multi_reduction <maximumf>, %22, %cst_8 [2] : vector<8x8x8xf32> to vector<8x8xf32>
    %24 = vector.shape_cast %23 : vector<8x8xf32> to vector<8x8x1xf32>
    %25 = vector.broadcast %24 : vector<8x8x1xf32> to vector<8x8x8xf32>
    %26 = arith.subf %22, %25 : vector<8x8x8xf32>
    %27 = math.exp %26 : vector<8x8x8xf32>
    %cst_9 = arith.constant dense<0.000000e+00> : vector<8x8xf32>
    %28 = vector.multi_reduction <add>, %27, %cst_9 [2] : vector<8x8x8xf32> to vector<8x8xf32>
    %29 = vector.shape_cast %28 : vector<8x8xf32> to vector<8x8x1xf32>
    %30 = tpu.reciprocal %29 {approx = true} : vector<8x8x1xf32> -> vector<8x8x1xf32>
    %31 = vector.broadcast %30 : vector<8x8x1xf32> to vector<8x8x8xf32>
    %32 = arith.mulf %27, %31 : vector<8x8x8xf32>
    %33 = arith.truncf %32 : vector<8x8x8xf32> to vector<8x8x8xbf16>
    "tpu.trace_start"() <{level = 10 : i32, message = "hqk,hkd->hqd"}> : () -> ()
    %cst_10 = arith.constant dense<0.000000e+00> : vector<8x8x4xf32>
    %34 = tpu.matmul %33, %21, %cst_10 {dimension_numbers = #tpu.dot_dimension_numbers<[2], [1], [1], [2], [0, 0, 0, 1, 1, 2], [0], [0]>} : vector<8x8x8xbf16>, vector<8x8x4xbf16>, vector<8x8x4xf32> -> vector<8x8x4xf32>
    "tpu.trace_stop"() : () -> ()
    %35 = tpu.transpose %34, [1, 0, 2] : vector<8x8x4xf32> -> vector<8x8x4xf32>
    %36 = vector.shape_cast %35 : vector<8x8x4xf32> to vector<8x32xf32>
    %37 = arith.truncf %36 : vector<8x32xf32> to vector<8x32xbf16>
    %c0_11 = arith.constant 0 : index
    %c0_12 = arith.constant 0 : index
    %38 = vector.load %arg4[%c0_11, %c0_12] : memref<32x32xbf16, #tpu.memory_space<vmem>>, vector<32x32xbf16>
    %cst_13 = arith.constant dense<0.000000e+00> : vector<8x32xf32>
    %39 = tpu.matmul %37, %38, %cst_13 {dimension_numbers = #tpu.dot_dimension_numbers<[1], [0], [0], [1], [0, 0, 1, 1], [], []>} : vector<8x32xbf16>, vector<32x32xbf16>, vector<8x32xf32> -> vector<8x32xf32>
    %c0_14 = arith.constant 0 : index
    %c0_15 = arith.constant 0 : index
    %40 = vector.load %arg5[%c0_14, %c0_15] : memref<1x32xf32, #tpu.memory_space<vmem>>, vector<1x32xf32>
    %41 = vector.broadcast %40 : vector<1x32xf32> to vector<8x32xf32>
    %42 = arith.addf %39, %41 : vector<8x32xf32>
    %c0_16 = arith.constant 0 : index
    %c0_17 = arith.constant 0 : index
    %c0_18 = arith.constant 0 : index
    %43 = vector.load %arg6[%c0_16, %c0_17, %c0_18] : memref<1x8x32xf32, #tpu.memory_space<vmem>>, vector<1x8x32xf32>
    %44 = vector.shape_cast %43 : vector<1x8x32xf32> to vector<8x32xf32>
    %45 = vector.shape_cast %42 : vector<8x32xf32> to vector<1x8x32xf32>
    tpu.vector_store %arg6[%c0_16, %c0_17, %c0_18], %45 {strides = array<i32>} : memref<1x8x32xf32, #tpu.memory_space<vmem>>, vector<1x8x32xf32>,
    return
  }
  func.func @transform_0(%arg0: i32) -> (i32, i32, i32) {
    %c0_i32 = arith.constant 0 : i32
    %c0_i32_0 = arith.constant 0 : i32
    %c0_i32_1 = arith.constant 0 : i32
    return %arg0, %c0_i32, %c0_i32_0 : i32, i32, i32
  }
  func.func @transform_1(%arg0: i32) -> (i32, i32) {
    %c0_i32 = arith.constant 0 : i32
    %c0_i32_0 = arith.constant 0 : i32
    %c0_i32_1 = arith.constant 0 : i32
    return %c0_i32, %c0_i32_0 : i32, i32
  }
  func.func @transform_2(%arg0: i32) -> (i32, i32) {
    %c0_i32 = arith.constant 0 : i32
    %c0_i32_0 = arith.constant 0 : i32
    %c0_i32_1 = arith.constant 0 : i32
    return %c0_i32, %c0_i32_0 : i32, i32
  }
  func.func @transform_3(%arg0: i32) -> (i32, i32) {
    %c0_i32 = arith.constant 0 : i32
    %c0_i32_0 = arith.constant 0 : i32
    %c0_i32_1 = arith.constant 0 : i32
    return %c0_i32, %c0_i32_0 : i32, i32
  }
  func.func @transform_4(%arg0: i32) -> (i32, i32) {
    %c0_i32 = arith.constant 0 : i32
    %c0_i32_0 = arith.constant 0 : i32
    %c0_i32_1 = arith.constant 0 : i32
    return %c0_i32, %c0_i32_0 : i32, i32
  }
  func.func @transform_5(%arg0: i32) -> (i32, i32, i32) {
    %c0_i32 = arith.constant 0 : i32
    %c0_i32_0 = arith.constant 0 : i32
    %c0_i32_1 = arith.constant 0 : i32
    return %arg0, %c0_i32, %c0_i32_0 : i32, i32, i32
  }
}

</mosaic_0001>

<bundles_post_ra>
// kernel: tpu_custom_call.1
= control target key start
LH: loop header
LB: loop body
LE: loop exit
PB: predicated region body
PF: predicated region fallthrough
CT: control target
= control target key end

     0   :  { %10 = vsyncpa [#allocation3], 0  ;;  %s3753_s0 = inlined_call_operand.hbm [shape: f32[2,8,32], index: 0, kind: input, shape index: {}]   ;;  %s3754_s1 = inlined_call_operand.hbm [shape: bf16[32,96], index: 1, kind: input, shape index: {}]   ;;  %s3755_s2 = inlined_call_operand.vmem [shape: f32[1,96], index: 2, kind: input, shape index: {}]   ;;  %s3756_s3 = inlined_call_operand.hbm [shape: bf16[32,32], index: 3, kind: input, shape index: {}]   ;;  %s3757_s4 = inlined_call_operand.vmem [shape: f32[1,32], index: 4, kind: input, shape index: {}]   ;;  %s3758_s5 = inlined_call_operand.hbm [shape: f32[2,8,32], index: 5, kind: output, shape index: {}]  }
   0x1   :  { %12 = vsyncpa [#allocation3 + $0x1], 0 }
   0x2   :  { %13 = vsyncpa [#allocation6], 0 }
   0x3   :  { %14 = vsyncpa [#allocation4], 0 }
   0x4   :  { %16 = vsyncpa [#allocation4 + $0x1], 0  ;;  %s3144_s18 = smov 0   ;;  %s3146_s19 = smov 0  }
   0x5   :  { %s3148_s20 = smov 0   ;;  %s3150_s21 = smov 0  }
   0x6 LB: > { %s3165_s22 = sadd.s32 4294967295, %s3086_s21   ;;  %s2583_s23 = sadd.s32 4294967294, %s3086_s21   ;;  %s3086_s21 = sphi %s3150_s21, %s3778_s21   ;;  %s3082_s20 = sphi %s3148_s20, %s3777_s20   ;;  %s3078_s19 = sphi %s3146_s19, %s3776_s19   ;;  %s3074_s18 = sphi %s3144_s18, %s3775_s18  }
   0x7   : > { %p42_p0 = scmp.ne.s32.totalorder %s3078_s19, %s3074_s18  ;;  %p3759_p1 = scmp.eq.s32.totalorder %s3165_s22, 0 }
   0x8   : > { %p156_p3 = scmp.eq.s32.totalorder %s2583_s23, 1  ;;  %p2584_p5 = scmp.ge.s32.totalorder %s3086_s21, 1 }
   0x9   : > { %p3174_p4 = por %p3759_p1, %p42_p0  ;;  %p163_p7 = scmp.lt.s32.totalorder %s3086_s21, 3 }
   0xa   : > { %p3179_p6 = por %p156_p3, %p42_p0  ;;  %s3088_s27 = smov [#allocation5]  }
   0xb   : > { %s3762_s24 = scalar_select %p3174_p4, 1, 0 }
   0xc   : > { %s3763_s25 = scalar_select %p3179_p6, 1, 0 }
   0xd   : > { %p3184_p8 = pnand %p2584_p5, %p163_p7  ;;  %s175_s28 = sshll.u32 %s3088_s27, 4  ;;  %s3188_s28 = int_to_ptr.vmem [resolvable:$true] %s175_s28 }
   0xe   : > { %s3089_s30 = smov [#allocation7]   ;;  %s2930_s9 = scalar_lea.hbm %s3754_s1, 256 }
   0xf   : > { %p2817_p9 = pneg %p3184_p8  ;;  %s191_s6 = sshll.u32 %s3089_s30, 4  ;;  %s3199_s6 = int_to_ptr.vmem [resolvable:$true] %s191_s6 }
  0x10   : > { %p2931_p12 = scmp.ne.s32.totalorder %s3754_s1, %s2930_s9  ;;  %p2937_p5 = scmp.lt.u32.totalorder %s2930_s9, %s3754_s1 }
  0x11   : > { %p3195_p11 = pnand %p2817_p9, %p3759_p1 }
  0x13   : > { %p2932_p13 = pneg %p3195_p11 }
  0x15   : > { %p2933_p0 = pnand %p2932_p13, %p2931_p12 }
  0x17   : > { %p2934_p3 = pneg %p2933_p0 }
  0x19   : > { %p2939_p7 = pnand %p2937_p5, %p2934_p3 }
  0x1b   : > { %2942 = shalt.err (!%p2939_p7)
}
  0x1c   : > { %s2943_s14 = scalar_lea.vmem %s3188_s28, 256  ;;  %p2951_p2 = scmp.lt.s32.totalorder %s3188_s28, %s3188_s28 }
  0x1d   : > { %p2944_p9 = scmp.ne.s32.totalorder %s3188_s28, %s2943_s14  ;;  %p2952_p12 = scmp.lt.s32.totalorder %s2943_s14, %s2943_s14 }
  0x1f   : > { %p2946_p10 = pnand %p2944_p9, %p2932_p13  ;;  %p2953_p0 = por %p2952_p12, %p2951_p2 }
  0x21   : > { %p2947_p1 = pneg %p2946_p10 }
  0x23   : > { %p2954_p6 = pnand %p2953_p0, %p2947_p1 }
  0x25   : > { %2957 = shalt.err (!%p2954_p6)
}
  0x26   : > { %s3090_s15 = smov 64   ;;  %s3091_s16 = smov 4  }
  0x27   : > { %2820 = dma.hbm_to_vmem [thread:$0]  (!%p3195_p11), %s3754_s1, 256, %s3188_s28, [#allocation6], %s3090_s15, %s3090_s15, %s3091_s16  }
  0x28   : > { %s2958_s7 = scalar_lea.hbm %s3756_s3, 256 }
  0x29   : > { %p2959_p2 = scmp.ne.s32.totalorder %s3756_s3, %s2958_s7  ;;  %p2965_p10 = scmp.lt.u32.totalorder %s2958_s7, %s3756_s3 }
  0x2b   : > { %p2961_p1 = pnand %p2959_p2, %p2932_p13 }
  0x2d   : > { %p2962_p6 = pneg %p2961_p1 }
  0x2f   : > { %p2967_p3 = pnand %p2965_p10, %p2962_p6 }
  0x31   : > { %2970 = shalt.err (!%p2967_p3)
}
  0x32   : > { %s2971_s28 = scalar_lea.vmem %s3199_s6, 256  ;;  %p2979_p12 = scmp.lt.s32.totalorder %s3199_s6, %s3199_s6 }
  0x33   : > { %p2972_p5 = scmp.ne.s32.totalorder %s3199_s6, %s2971_s28  ;;  %p2980_p0 = scmp.lt.s32.totalorder %s2971_s28, %s2971_s28 }
  0x35   : > { %p2974_p7 = pnand %p2972_p5, %p2932_p13  ;;  %p2981_p2 = por %p2980_p0, %p2979_p12 }
  0x37   : > { %p2975_p9 = pneg %p2974_p7 }
  0x39   : > { %p2982_p1 = pnand %p2981_p2, %p2975_p9 }
  0x3b   : > { %2985 = shalt.err (!%p2982_p1)
}
  0x3c   : > { %2823 = dma.hbm_to_vmem [thread:$0]  (!%p3195_p11), %s3756_s3, 256, %s3199_s6, [#allocation6], %s3090_s15, %s3090_s15, %s3091_s16  }
  0x3d   : > { %s3254_s14 = sadd.s32 1, %s3086_s21   ;;  %s29_s29 = sadd.s32 1, %s3082_s20 }
  0x3e   : > { %s26_s17 = ssub.s32 %s3086_s21, %s3254_s14  ;;  %p36_p13 = scmp.ne.s32.totalorder %s3082_s20, %s3078_s19 }
  0x3f   : > { %p27_p6 = scmp.eq.s32.totalorder %s26_s17, 0  ;;  %p37_p10 = scmp.eq.s32.totalorder %s3086_s21, 0 }
  0x40   : > { %p3766_p3 = scmp.eq.s32.totalorder %s3165_s22, 1  ;;  %p2834_p7 = scmp.lt.s32.totalorder %s3086_s21, 2 }
  0x41   : > { %s3270_s27 = scalar_select %p27_p6, %s3082_s20, %s29_s29  }
  0x42   : > { %p3264_p5 = por %p3766_p3, %p36_p13  ;;  %p38_p9 = por %p37_p10, %p36_p13 }
  0x43   : > { %s208_s30 = sand.u32 1, %s3082_s20   ;;  %s2589_s6 = sshll.u32 %s3086_s21, 7 }
  0x44   : > { %s3767_s23 = scalar_select %p3264_p5, 1, 0 }
  0x45   : > { %s2588_s7 = sshll.u32 %s208_s30, 3  ;;  %s3277_s8 = scalar_lea.hbm %s3753_s0, %s2589_s6 }
  0x46   : > { %s212_s9 = scalar_lea.vmem [#allocation2], %s2588_s7  ;;  %p3281_p11 = pnand %p2834_p7, %p38_p9 }
  0x47   : > { %s219_s10 = sshll.u32 %s212_s9, 4  ;;  %s209_s28 = scalar_lea.sflag [#allocation3], %s208_s30  ;;  %s3279_s10 = int_to_ptr.vmem [resolvable:$true] %s219_s10 }
  0x48   : > { %s2986_s12 = scalar_lea.hbm %s3277_s8, 128  ;;  %p2988_p0 = pneg %p3281_p11 }
  0x49   : > { %p2987_p12 = scmp.ne.s32.totalorder %s3277_s8, %s2986_s12  ;;  %s2991_s17 = scalar_lea.hbm %s3753_s0, 256 }
  0x4a   : > { %p2992_p13 = scmp.lt.u32.totalorder %s3277_s8, %s3753_s0  ;;  %p2993_p6 = scmp.lt.u32.totalorder %s2991_s17, %s2986_s12 }
  0x4b   : > { %p2989_p2 = pnand %p2988_p0, %p2987_p12  ;;  %p2995_p3 = scmp.lt.u32.totalorder %s2986_s12, %s3277_s8 }
  0x4c   : > { %p2994_p10 = por %p2993_p6, %p2992_p13 }
  0x4d   : > { %p2990_p1 = pneg %p2989_p2 }
  0x4e   : > { %p2996_p7 = por %p2995_p3, %p2994_p10 }
  0x50   : > { %p2997_p9 = pnand %p2996_p7, %p2990_p1 }
  0x52   : > { %3000 = shalt.err (!%p2997_p9)
}
  0x53   : > { %s3001_s30 = scalar_lea.vmem %s3279_s10, 128  ;;  %s3092_s15 = smov [#allocation2]  }
  0x54   : > { %p3002_p12 = scmp.ne.s32.totalorder %s3279_s10, %s3001_s30  ;;  %s3006_s16 = sshll.u32 %s3092_s15, 4  ;;  %s3007_s16 = int_to_ptr.vmem [resolvable:$false] %s3006_s16 }
  0x55   : > { %s3008_s9 = scalar_lea.vmem %s3007_s16, 256  ;;  %p3009_p4 = scmp.lt.s32.totalorder %s3279_s10, %s3007_s16 }
  0x56   : > { %p3004_p2 = pnand %p3002_p12, %p2988_p0  ;;  %p3010_p13 = scmp.lt.s32.totalorder %s3008_s9, %s3001_s30 }
  0x58   : > { %p3005_p5 = pneg %p3004_p2  ;;  %p3011_p6 = por %p3010_p13, %p3009_p4 }
  0x5a   : > { %p3012_p10 = pnand %p3011_p6, %p3005_p5 }
  0x5c   : > { %3015 = shalt.err (!%p3012_p10)
}
  0x5d   : > { %2827 = dma.hbm_to_vmem [thread:$0]  (!%p3281_p11), %s3277_s8, 128, %s3279_s10, %s209_s28  }
  0x5e   : > { %228 = sbr.rel (%p3184_p8) target bundleno = 1782 (0x6f6), region = 40  ;;  %s3313_s12 = sand.u32 (!%p3184_p8), 1, %s3078_s19  }
  0x5f   : > { %s2591_s13 = sshll.u32 (!%p3184_p8), %s3313_s12, 3  ;;  %s231_s29 = scalar_lea.sflag (!%p3184_p8), [#allocation3], %s3313_s12 }
  0x60   : > { %s234_s17 = scalar_lea.vmem (!%p3184_p8), [#allocation2], %s2591_s13  ;;  %p3769_p4 = scmp.ne.s32.totalorder (!%p3184_p8), %s3762_s24, 0 }
  0x65   : > { %3061 = dma.done.wait (%p3769_p4), %s231_s29, 128  }
  0x66   : > { %3063 = vsyncadd (%p3769_p4), %s231_s29, 4294967168  ;;  %p3770_p5 = scmp.eq.s32.totalorder %s3165_s22, 0 }
  0x68   : > { %3065 = dma.done.wait (%p3770_p5), [#allocation6], 512   ;;  %p3771_p8 = pmov %p3770_p5 }
  0x69   : > { %v3093_v0 = vmov 0.0   ;;  %vm3094_vm0 = vmmov 0   ;;  %v2894_v1 = vld [vmem:[#allocation5] sm:$0xff]   ;;  %v2895_v2 = vld [vmem:[#allocation5 + $0x8] sm:$0xff]   ;;  %v270_v3 = vld [vmem:[%s234_s17] sm:$0xff]  ;;  %vm295_vm1 = vcmask 261120   ;;  %v367_v21 = vlaneseq }
  0x6a   : > { %3067 = vsyncadd (%p3771_p8), [#allocation6], 4294966784  ;;  %2693 = vmatprep.subr.bf16.mxu0 %v3093_v0  ;;  %2697 = vmatprep.mubr.msk.bf16.mxu0 %vm3094_vm0, %v3093_v0  ;;  %v271_v4 = vpack.c.bf16 %v270_v3, %v270_v3  ;;  %v2595_v5 = vld [vmem:[%s3755_s2] ss:$0 sm:$0xff]  ;;  %s3095_s8 = smov 116   ;;  %s3096_s10 = smov 124  }
  0x6b   : > { %2701 = vmatprep.subr.bf16.mxu1 %v3093_v0  ;;  %2703 = vmatprep.mubr.msk.bf16.mxu1 %vm3094_vm0, %v3093_v0  ;;  %s3097_s11 = smov 112   ;;  %s3098_s28 = smov 120   ;;  %v3104_v19 = vmov 1983009808   ;;  %v3105_v22 = vmov 1934713408  }
  0x6c   : > { %2694 = vmatpush3.bf16.msra.mxu0 %v2894_v1  ;;  %s3099_s7 = smov 104   ;;  %s3100_s6 = smov 108   ;;  %v365_v20 = vunpack.c.l.s4 %v3104_v19  ;;  %v429_v23 = vunpack.c.l.s4 %v3105_v22  ;;  %v368_v25 = vshrl.u32 %v367_v21, 7  ;;  %vm1265_vm2 = vcmask 31744  }
  0x6d   : > { %2695 = vmatprep.subr.bf16.mxu0 %v3093_v0  ;;  %s3101_s30 = smov 96   ;;  %s3102_s15 = smov 100   ;;  %vm1634_vm3 = vcmask 64512   ;;  %vm1734_vm4 = vcmask 1043456   ;;  %vm2402_vm5 = vcmask 97280   ;;  %vm2404_vm6 = vcmask 130048  }
  0x6e   : > { %s3103_s16 = smov 64   ;;  %v366_v24 = vunpack.c.0.s8 %v365_v20  ;;  %v430_v28 = vunpack.c.0.s8 %v429_v23  ;;  %s3106_s9 = smov 8   ;;  %vm2406_vm7 = vcmask 162816   ;;  %vm2408_vm8 = vcmask 195584  }
  0x6f   : > { %s3107_s29 = smov 4   ;;  %s3108_s17 = smov 12   ;;  %vm2410_vm9 = vcmask 228352  }
  0x70   : > { %2696 = vmatpush3.bf16.msra.mxu0 %v2895_v2  ;;  %v3372_v29 = vsub.s32 %v366_v24, %v368_v25  ;;  %v3374_v36 = vsub.s32 %v430_v28, %v368_v25  ;;  %s3109_s24 = smov 20   ;;  %s3110_s26 = smov 16  }
  0x71   : > { %2707 = vmatprep.subr.bf16.mxu0 %v3093_v0  ;;  %p3772_p0 = scmp.ne.s32.totalorder %s3767_s23, 0 }
  0x73   : > { %2698 = vmatmul.mubr.msk.bf16.vlgmr.msra.gmra.mrb[0].mxu0 %vm295_vm1, %v271_v4 }
  0x74   : > { %2709 = vmatprep.mubr.msk.bf16.mxu0 %vm3094_vm0, %v3093_v0 }
 0x146   : > { %v333_v6 = vpop.f32.mrb[0].mxu0 }
 0x147   : > { %v334_v7 = vadd.f32 %v2595_v5, %v333_v6  ;;  %v2699_v8 = vpop.f32.mrb[1].mxu0 }
 0x148   : > { %v336_v9 = vpop.f32.mrb[2].mxu0 }
 0x149   : > { %647 = vrot.lane.b32.xlu1 %v334_v7, %s3095_s8  ;;  %643 = vrot.lane.b32.xlu0 %v334_v7, %s3096_s10  ;;  %v2700_v10 = vpop.f32.mrb[3].mxu0  ;;  %v3350_v14 = vmul.f32 0.5, %v334_v7 }
 0x14d   : > { %649 = vrot.lane.b32.xlu1 %v334_v7, %s3097_s11  ;;  %645 = vrot.lane.b32.xlu0 %v334_v7, %s3098_s28 }
 0x151   : > { %653 = vrot.lane.b32.xlu1 %v334_v7, %s3099_s7  ;;  %651 = vrot.lane.b32.xlu0 %v334_v7, %s3100_s6 }
 0x155   : > { %657 = vrot.lane.b32.xlu1 %v334_v7, %s3101_s30  ;;  %655 = vrot.lane.b32.xlu0 %v334_v7, %s3102_s15 }
 0x1bb   : > { %v3341_v11 = vpop.permute.xlu0 %643  ;;  %v3344_v12 = vpop.permute.xlu1 %647 }
 0x1bc   : > { %659 = vrot.lane.b32.xlu0 %v3341_v11, %s3101_s30 }
 0x1bf   : > { %v3346_v13 = vpop.permute.xlu0 %645  ;;  %v3354_v15 = vpop.permute.xlu1 %649 }
 0x1c0   : > { %663 = vrot.lane.b32.xlu0 %v3344_v12, %s3101_s30  ;;  %661 = vrot.lane.b32.xlu1 %v3346_v13, %s3101_s30 }
 0x1c3   : > { %v3358_v16 = vpop.permute.xlu0 %651  ;;  %v3360_v17 = vpop.permute.xlu1 %653 }
 0x1c4   : > { %344 = vrot.lane.b32.xlu0 %v3350_v14, %s3098_s28  ;;  %341 = vrot.lane.b32.xlu1 %v3350_v14, %s3096_s10  ;;  %s3112_s10 = smov 24  }
 0x1c7   : > { %v3364_v18 = vpop.permute.xlu0 %655  ;;  %v658_v26 = vpop.permute.xlu1 %657 }
 0x1c8   : > { %665 = vrot.lane.b32.xlu0 %v3354_v15, %s3101_s30  ;;  %347 = vrot.lane.b32.xlu1 %v3350_v14, %s3095_s8  ;;  %s3111_s8 = smov 28  }
 0x1cc   : > { %669 = vrot.lane.b32.xlu0 %v3360_v17, %s3101_s30  ;;  %667 = vrot.lane.b32.xlu1 %v3358_v16, %s3101_s30 }
 0x1d0   : > { %350 = vrot.lane.b32.xlu0 %v3350_v14, %s3097_s11  ;;  %671 = vrot.lane.b32.xlu1 %v3364_v18, %s3101_s30 }
 0x1d4   : > { %356 = vrot.lane.b32.xlu0 %v3350_v14, %s3099_s7  ;;  %353 = vrot.lane.b32.xlu1 %v3350_v14, %s3100_s6  ;;  %s2652_s7 = sshll.u32 %s3165_s22, 7  ;;  %s268_s6 = scalar_lea.vmem [#allocation8], %s2591_s13 }
 0x1d5   : > { %s2494_s30 = sshll.u32 %s268_s6, 4  ;;  %s2481_s22 = scalar_lea.sflag [#allocation4], %s3313_s12  ;;  %s3710_s30 = int_to_ptr.vmem [resolvable:$true] %s2494_s30 }
 0x1d6   : > { %s3016_s13 = scalar_lea.vmem %s3710_s30, 128 }
 0x1d7   : > { %p3017_p11 = scmp.ne.s32.totalorder %s3710_s30, %s3016_s13 }
 0x1d8   : > { %359 = vrot.lane.b32.xlu1 %v3350_v14, %s3102_s15 }
 0x1d9   : > { %p3018_p1 = pnand %p3017_p11, %p3772_p0 }
 0x1db   : > { %p3019_p3 = pneg %p3018_p1 }
 0x1dc   : > { %961 = vrot.lane.b32.xlu1 %v334_v7, %s3103_s16 }
 0x22e   : > { %v660_v27 = vpop.permute.xlu0 %659 }
 0x232   : > { %v662_v30 = vpop.permute.xlu1 %661  ;;  %v664_v31 = vpop.permute.xlu0 %663 }
 0x233   : > { %v681_v32 = vcombine.low %v658_v26, %v662_v30  ;;  %v682_v33 = vcombine.high %v658_v26, %v662_v30  ;;  %v697_v34 = vcombine.low %v660_v27, %v664_v31  ;;  %v698_v35 = vcombine.high %v660_v27, %v664_v31 }
 0x235   : > { %v689_v37 = vrot.slane %v681_v32, %v3372_v29  ;;  %v696_v38 = vrot.slane %v682_v33, %v3372_v29  ;;  %v705_v39 = vrot.slane %v697_v34, %v3372_v29  ;;  %v712_v40 = vrot.slane %v698_v35, %v3372_v29 }
 0x236   : > { %v345_v41 = vpop.permute.xlu0 %344  ;;  %v342_v42 = vpop.permute.xlu1 %341 }
 0x237   : > { %v745_v43 = vcombine.low %v689_v37, %v705_v39  ;;  %v746_v44 = vcombine.high %v689_v37, %v705_v39  ;;  %v761_v45 = vcombine.low %v696_v38, %v712_v40  ;;  %v762_v46 = vcombine.high %v696_v38, %v712_v40 }
 0x238   : > { %v362_v51 = vcombine.low %v3350_v14, %v345_v41  ;;  %v363_v52 = vcombine.high %v3350_v14, %v345_v41 }
 0x239   : > { %v753_v47 = vrot.slane %v745_v43, %v3374_v36  ;;  %v760_v48 = vrot.slane %v746_v44, %v3374_v36  ;;  %v769_v49 = vrot.slane %v761_v45, %v3374_v36  ;;  %v776_v50 = vrot.slane %v762_v46, %v3374_v36 }
 0x23a   : > { %v666_v53 = vpop.permute.xlu0 %665  ;;  %v348_v54 = vpop.permute.xlu1 %347  ;;  %v370_v2 = vrot.slane %v362_v51, %v3372_v29  ;;  %v377_v3 = vrot.slane %v363_v52, %v3372_v29 }
 0x23b   : > { %v2607_v55 = vcombine.low %v753_v47, %v760_v48  ;;  %v2609_v56 = vcombine.high %v753_v47, %v760_v48  ;;  %v2611_v57 = vcombine.low %v769_v49, %v776_v50  ;;  %v2613_v58 = vcombine.high %v769_v49, %v776_v50 }
 0x23c   : > { %v378_v59 = vcombine.low %v342_v42, %v348_v54  ;;  %v379_v60 = vcombine.high %v342_v42, %v348_v54 }
 0x23d   : > { %v3387_v61 = vrot.slane %v2607_v55, %v3372_v29  ;;  %v3390_v62 = vrot.slane %v2609_v56, %v3372_v29  ;;  %v3393_v63 = vrot.slane %v2611_v57, %v3372_v29  ;;  %v3396_v1 = vrot.slane %v2613_v58, %v3372_v29 }
 0x23e   : > { %v386_v4 = vrot.slane %v378_v59, %v3372_v29  ;;  %v393_v5 = vrot.slane %v379_v60, %v3372_v29  ;;  %v670_v6 = vpop.permute.xlu0 %669  ;;  %v668_v7 = vpop.permute.xlu1 %667 }
 0x23f   : > { %v713_v8 = vcombine.low %v666_v53, %v670_v6  ;;  %v714_v9 = vcombine.high %v666_v53, %v670_v6  ;;  %v881_v10 = vcombine.low %v3387_v61, %v3390_v62  ;;  %v913_v14 = vcombine.low %v3393_v63, %v3396_v1 }
 0x240   : > { %v426_v19 = vcombine.low %v370_v2, %v386_v4  ;;  %v427_v20 = vcombine.high %v370_v2, %v386_v4  ;;  %v442_v21 = vcombine.low %v377_v3, %v393_v5  ;;  %v443_v22 = vcombine.high %v377_v3, %v393_v5 }
 0x241   : > { %v721_v23 = vrot.slane %v713_v8, %v3372_v29  ;;  %v728_v24 = vrot.slane %v714_v9, %v3372_v29  ;;  %v889_v25 = vrot.slane %v881_v10, %v3374_v36  ;;  %v921_v26 = vrot.slane %v913_v14, %v3374_v36 }
 0x242   : > { %v434_v27 = vrot.slane %v426_v19, %v3374_v36  ;;  %v441_v28 = vrot.slane %v427_v20, %v3374_v36  ;;  %v450_v30 = vrot.slane %v442_v21, %v3374_v36  ;;  %v457_v31 = vrot.slane %v443_v22, %v3374_v36  ;;  %v351_v32 = vpop.permute.xlu0 %350  ;;  %v672_v33 = vpop.permute.xlu1 %671 }
 0x243   : > { %v729_v34 = vcombine.low %v668_v7, %v672_v33  ;;  %v730_v35 = vcombine.high %v668_v7, %v672_v33  ;;  %v945_v37 = vcombine.low %v889_v25, %v921_v26  ;;  %v946_v38 = vcombine.high %v889_v25, %v921_v26 }
 0x244   : > { %v2599_v39 = vcombine.low %v434_v27, %v441_v28  ;;  %v2601_v40 = vcombine.high %v434_v27, %v441_v28  ;;  %v2603_v41 = vcombine.low %v450_v30, %v457_v31  ;;  %v2605_v42 = vcombine.high %v450_v30, %v457_v31 }
 0x245   : > { %v737_v43 = vrot.slane %v729_v34, %v3372_v29  ;;  %v744_v44 = vrot.slane %v730_v35, %v3372_v29  ;;  %v953_v45 = vpack.c.bf16 %v945_v37, %v945_v37  ;;  %v954_v46 = vpack.c.bf16 %v946_v38, %v946_v38 }
 0x246   : > { %v506_v47 = vrot.slane %v2599_v39, %v3372_v29  ;;  %v522_v48 = vrot.slane %v2601_v40, %v3372_v29  ;;  %v538_v49 = vrot.slane %v2603_v41, %v3372_v29  ;;  %v554_v50 = vrot.slane %v2605_v42, %v3372_v29  ;;  %v357_v51 = vpop.permute.xlu0 %356  ;;  %v354_v52 = vpop.permute.xlu1 %353 }
 0x247   : > { %v777_v53 = vcombine.low %v721_v23, %v737_v43  ;;  %v778_v54 = vcombine.high %v721_v23, %v737_v43  ;;  %v793_v55 = vcombine.low %v728_v24, %v744_v44  ;;  %v794_v56 = vcombine.high %v728_v24, %v744_v44 }
 0x248   : > { %v563_v57 = vcombine.high %v506_v47, %v522_v48  ;;  %v394_v58 = vcombine.low %v351_v32, %v357_v51  ;;  %v395_v59 = vcombine.high %v351_v32, %v357_v51  ;;  %v595_v5 = vcombine.high %v538_v49, %v554_v50 }
 0x249   : > { %v785_v60 = vrot.slane %v777_v53, %v3374_v36  ;;  %v792_v2 = vrot.slane %v778_v54, %v3374_v36  ;;  %v801_v3 = vrot.slane %v793_v55, %v3374_v36  ;;  %v808_v4 = vrot.slane %v794_v56, %v3374_v36 }
 0x24a   : > { %v402_v6 = vrot.slane %v394_v58, %v3372_v29  ;;  %v1270_v7 = vsel %vm1265_vm2, %v953_v45, 0  ;;  %v1316_v8 = vsel %vm1265_vm2, %v954_v46, 0  ;;  %v360_v9 = vpop.permute.xlu1 %359  ;;  %v409_v20 = vrot.slane %v395_v59, %v3372_v29 }
 0x24b   : > { %v2608_v10 = vcombine.low %v785_v60, %v792_v2  ;;  %v2610_v14 = vcombine.high %v785_v60, %v792_v2  ;;  %v2612_v19 = vcombine.low %v801_v3, %v808_v4  ;;  %2702 = vmatpush3.bf16.xpose.msra.mxu1 %v1270_v7  ;;  %2708 = vmatpush3.bf16.xpose.msra.mxu0 %v1316_v8 }
 0x24c   : > { %v410_v21 = vcombine.low %v354_v52, %v360_v9  ;;  %v411_v22 = vcombine.high %v354_v52, %v360_v9  ;;  %v562_v23 = vcombine.low %v506_v47, %v522_v48  ;;  %v594_v24 = vcombine.low %v538_v49, %v554_v50  ;;  %2713 = vmatprep.subr.bf16.mxu1 %v3093_v0 }
 0x24d   : > { %v3429_v25 = vrot.slane %v2608_v10, %v3372_v29  ;;  %v3432_v26 = vrot.slane %v2610_v14, %v3372_v29  ;;  %v3435_v27 = vrot.slane %v2612_v19, %v3372_v29  ;;  %v2614_v28 = vcombine.high %v801_v3, %v808_v4  ;;  %2719 = vmatprep.subr.bf16.mxu0 %v3093_v0 }
 0x24e   : > { %v418_v30 = vrot.slane %v410_v21, %v3372_v29  ;;  %v425_v31 = vrot.slane %v411_v22, %v3372_v29  ;;  %v570_v32 = vrot.slane %v562_v23, %v3374_v36  ;;  %v602_v33 = vrot.slane %v594_v24, %v3374_v36 }
 0x24f   : > { %v882_v34 = vcombine.high %v3387_v61, %v3390_v62  ;;  %v914_v35 = vcombine.high %v3393_v63, %v3396_v1  ;;  %v577_v37 = vrot.slane %v563_v57, %v3374_v36  ;;  %v609_v38 = vrot.slane %v595_v5, %v3374_v36 }
 0x250   : > { %v458_v39 = vcombine.low %v402_v6, %v418_v30  ;;  %v459_v40 = vcombine.high %v402_v6, %v418_v30  ;;  %v474_v41 = vcombine.low %v409_v20, %v425_v31  ;;  %v475_v42 = vcombine.high %v409_v20, %v425_v31 }
 0x251   : > { %v626_v43 = vcombine.low %v570_v32, %v602_v33  ;;  %v627_v44 = vcombine.high %v570_v32, %v602_v33  ;;  %v896_v45 = vrot.slane %v882_v34, %v3374_v36  ;;  %v928_v46 = vrot.slane %v914_v35, %v3374_v36 }
 0x252   : > { %v466_v47 = vrot.slane %v458_v39, %v3374_v36  ;;  %v473_v61 = vrot.slane %v459_v40, %v3374_v36  ;;  %v482_v62 = vrot.slane %v474_v41, %v3374_v36  ;;  %v489_v63 = vrot.slane %v475_v42, %v3374_v36 }
 0x253   : > { %v634_v1 = vpack.c.bf16 %v626_v43, %v626_v43  ;;  %v635_v48 = vpack.c.bf16 %v627_v44, %v627_v44  ;;  %v947_v49 = vcombine.low %v896_v45, %v928_v46  ;;  %v948_v50 = vcombine.high %v896_v45, %v928_v46 }
 0x254   : > { %v2600_v51 = vcombine.low %v466_v47, %v473_v61  ;;  %v2602_v52 = vcombine.high %v466_v47, %v473_v61  ;;  %v2604_v53 = vcombine.low %v482_v62, %v489_v63  ;;  %v2606_v54 = vcombine.high %v482_v62, %v489_v63 }
 0x255   : > { %v880_v55 = vrot.slane %v2614_v28, %v3372_v29  ;;  %2704 = vmatmul.mubr.msk.bf16.vlgmr.msra.gmra.mrb[0].mxu1 %vm1265_vm2, %v634_v1  ;;  %2710 = vmatmul.mubr.msk.bf16.vlgmr.msra.gmra.mrb[4].mxu0 %vm1265_vm2, %v635_v48  ;;  %v955_v56 = vpack.c.bf16 %v947_v49, %v947_v49  ;;  %v956_v57 = vpack.c.bf16 %v948_v50, %v948_v50 }
 0x256   : > { %v513_v58 = vrot.slane %v2600_v51, %v3372_v29  ;;  %v529_v59 = vrot.slane %v2602_v52, %v3372_v29  ;;  %v545_v60 = vrot.slane %v2604_v53, %v3372_v29  ;;  %v561_v2 = vrot.slane %v2606_v54, %v3372_v29  ;;  %2715 = vmatprep.mubr.msk.bf16.mxu1 %vm3094_vm0, %v3093_v0 }
 0x257   : > { %v1362_v3 = vsel %vm1265_vm2, %v955_v56, 0  ;;  %2721 = vmatprep.mubr.msk.bf16.mxu0 %vm3094_vm0, %v3093_v0  ;;  %v1408_v6 = vsel %vm1265_vm2, %v956_v57, 0  ;;  %v628_v7 = vcombine.low %v577_v37, %v609_v38  ;;  %v897_v8 = vcombine.low %v3429_v25, %v3432_v26 }
 0x258   : > { %v578_v4 = vcombine.low %v513_v58, %v529_v59  ;;  %v610_v5 = vcombine.low %v545_v60, %v561_v2  ;;  %2714 = vmatpush3.bf16.xpose.msra.mxu1 %v1362_v3  ;;  %2720 = vmatpush3.bf16.xpose.msra.mxu0 %v1408_v6  ;;  %v929_v9 = vcombine.low %v3435_v27, %v880_v55 }
 0x259   : > { %2725 = vmatprep.subr.bf16.mxu1 %v3093_v0  ;;  %v629_v10 = vcombine.high %v577_v37, %v609_v38  ;;  %2731 = vmatprep.subr.bf16.mxu0 %v3093_v0  ;;  %v898_v14 = vcombine.high %v3429_v25, %v3432_v26  ;;  %v930_v19 = vcombine.high %v3435_v27, %v880_v55 }
 0x25a   : > { %v905_v20 = vrot.slane %v897_v8, %v3374_v36  ;;  %v937_v21 = vrot.slane %v929_v9, %v3374_v36  ;;  %v636_v22 = vpack.c.bf16 %v628_v7, %v628_v7  ;;  %v586_v23 = vrot.slane %v578_v4, %v3374_v36 }
 0x25b   : > { %v618_v24 = vrot.slane %v610_v5, %v3374_v36  ;;  %v912_v31 = vrot.slane %v898_v14, %v3374_v36  ;;  %v944_v32 = vrot.slane %v930_v19, %v3374_v36  ;;  %v637_v33 = vpack.c.bf16 %v629_v10, %v629_v10 }
 0x25c   : > { %v949_v28 = vcombine.low %v905_v20, %v937_v21  ;;  %v950_v30 = vcombine.high %v905_v20, %v937_v21  ;;  %v579_v40 = vcombine.high %v513_v58, %v529_v59  ;;  %v611_v41 = vcombine.high %v545_v60, %v561_v2 }
 0x25d   : > { %v630_v27 = vcombine.low %v586_v23, %v618_v24  ;;  %v631_v34 = vcombine.high %v586_v23, %v618_v24  ;;  %v951_v38 = vcombine.low %v912_v31, %v944_v32  ;;  %v952_v39 = vcombine.high %v912_v31, %v944_v32 }
 0x25e   : > { %v957_v25 = vpack.c.bf16 %v949_v28, %v949_v28  ;;  %v958_v26 = vpack.c.bf16 %v950_v30, %v950_v30  ;;  %v593_v46 = vrot.slane %v579_v40, %v3374_v36  ;;  %v625_v47 = vrot.slane %v611_v41, %v3374_v36  ;;  %v962_v40 = vpop.permute.xlu1 %961 }
 0x25f   : > { %2716 = vmatmul.mubr.msk.bf16.vlgmr.msra.gmra.mrb[4].mxu1 %vm1265_vm2, %v636_v22  ;;  %2722 = vmatmul.mubr.msk.bf16.vlgmr.msra.gmra.mrb[8].mxu0 %vm1265_vm2, %v637_v33  ;;  %v638_v42 = vpack.c.bf16 %v630_v27, %v630_v27  ;;  %v639_v43 = vpack.c.bf16 %v631_v34, %v631_v34  ;;  %v959_v44 = vpack.c.bf16 %v951_v38, %v951_v38 }
 0x260   : > { %2727 = vmatprep.mubr.msk.bf16.mxu1 %vm3094_vm0, %v3093_v0  ;;  %v1454_v35 = vsel %vm1265_vm2, %v957_v25, 0  ;;  %v1500_v37 = vsel %vm1265_vm2, %v958_v26, 0  ;;  %2733 = vmatprep.mubr.msk.bf16.mxu0 %vm3094_vm0, %v3093_v0  ;;  %v960_v45 = vpack.c.bf16 %v952_v39, %v952_v39  ;;  %v632_v63 = vcombine.low %v593_v46, %v625_v47 }
 0x261   : > { %2726 = vmatpush3.bf16.xpose.msra.mxu1 %v1454_v35  ;;  %2732 = vmatpush3.bf16.xpose.msra.mxu0 %v1500_v37  ;;  %v1546_v61 = vsel %vm1265_vm2, %v959_v44, 0  ;;  %v633_v1 = vcombine.high %v593_v46, %v625_v47 }
 0x262   : > { %2737 = vmatprep.subr.bf16.mxu1 %v3093_v0  ;;  %2743 = vmatprep.subr.bf16.mxu0 %v3093_v0  ;;  %v1592_v62 = vsel %vm1265_vm2, %v960_v45, 0  ;;  %v640_v48 = vpack.c.bf16 %v632_v63, %v632_v63 }
 0x263   : > { %v641_v49 = vpack.c.bf16 %v633_v1, %v633_v1 }
 0x268   : > { %2728 = vmatmul.mubr.msk.bf16.vlgmr.msra.gmra.mrb[8].mxu1 %vm1265_vm2, %v638_v42  ;;  %2734 = vmatmul.mubr.msk.bf16.vlgmr.msra.gmra.mrb[12].mxu0 %vm1265_vm2, %v639_v43 }
 0x269   : > { %2738 = vmatpush3.bf16.xpose.msra.mxu1 %v1546_v61  ;;  %2744 = vmatpush3.bf16.xpose.msra.mxu0 %v1592_v62 }
 0x26a   : > { %2739 = vmatprep.mubr.msk.bf16.mxu1 %vm3094_vm0, %v3093_v0  ;;  %2745 = vmatprep.mubr.msk.bf16.mxu0 %vm3094_vm0, %v3093_v0 }
 0x26b   : > { %2749 = vmatprep.subr.bf16.mxu1 %v3093_v0  ;;  %2755 = vmatprep.subr.bf16.mxu0 %v3093_v0 }
 0x270   : > { %2740 = vmatmul.mubr.msk.bf16.vlgmr.msra.gmra.mrb[12].mxu1 %vm1265_vm2, %v640_v48  ;;  %2746 = vmatmul.mubr.msk.bf16.vlgmr.msra.gmra.mrb[16].mxu0 %vm1265_vm2, %v641_v49 }
 0x271   : > { %2751 = vmatprep.mubr.msk.bf16.mxu1 %vm3094_vm0, %v3093_v0  ;;  %2757 = vmatprep.mubr.msk.bf16.mxu0 %vm3094_vm0, %v3093_v0 }
 0x328   : > { %v1306_v50 = vpop.f32.mrb[0].mxu1  ;;  %v1352_v51 = vpop.f32.mrb[4].mxu0 }
 0x329   : > { %v2705_v52 = vpop.f32.mrb[1].mxu1  ;;  %v2711_v53 = vpop.f32.mrb[5].mxu0  ;;  %v1635_v54 = vsel %vm1634_vm3, %v1306_v50, -inf  ;;  %v1638_v55 = vsel %vm1634_vm3, %v1352_v51, -inf }
 0x32a   : > { %1636 = vmax.xlane.f32.xlu0 %v1635_v54  ;;  %v1309_v56 = vpop.f32.mrb[2].mxu1  ;;  %1639 = vmax.xlane.f32.xlu1 %v1638_v55  ;;  %v1355_v57 = vpop.f32.mrb[6].mxu0 }
 0x32b   : > { %v2706_v58 = vpop.f32.mrb[3].mxu1  ;;  %v2712_v59 = vpop.f32.mrb[7].mxu0 }
 0x332   : > { %v1398_v60 = vpop.f32.mrb[4].mxu1  ;;  %v1444_v2 = vpop.f32.mrb[8].mxu0 }
 0x333   : > { %v2717_v3 = vpop.f32.mrb[5].mxu1  ;;  %v1641_v4 = vsel %vm1634_vm3, %v1398_v60, -inf  ;;  %v2723_v5 = vpop.f32.mrb[9].mxu0  ;;  %v1644_v10 = vsel %vm1634_vm3, %v1444_v2, -inf }
 0x334   : > { %1642 = vmax.xlane.f32.xlu0 %v1641_v4  ;;  %v1401_v6 = vpop.f32.mrb[6].mxu1  ;;  %v1447_v7 = vpop.f32.mrb[10].mxu0 }
 0x335   : > { %v2718_v8 = vpop.f32.mrb[7].mxu1  ;;  %v2724_v9 = vpop.f32.mrb[11].mxu0 }
 0x338   : > { %1645 = vmax.xlane.f32.xlu0 %v1644_v10 }
 0x33b   : > { %v1490_v14 = vpop.f32.mrb[8].mxu1  ;;  %v1536_v19 = vpop.f32.mrb[12].mxu0 }
 0x33c   : > { %v2729_v20 = vpop.f32.mrb[9].mxu1  ;;  %v2735_v21 = vpop.f32.mrb[13].mxu0  ;;  %v1647_v22 = vsel %vm1634_vm3, %v1490_v14, -inf  ;;  %v1650_v23 = vsel %vm1634_vm3, %v1536_v19, -inf }
 0x33d   : > { %v1493_v24 = vpop.f32.mrb[10].mxu1  ;;  %1648 = vmax.xlane.f32.xlu1 %v1647_v22  ;;  %1651 = vmax.xlane.f32.xlu0 %v1650_v23  ;;  %v1539_v28 = vpop.f32.mrb[14].mxu0 }
 0x33e   : > { %v2730_v30 = vpop.f32.mrb[11].mxu1  ;;  %v2736_v31 = vpop.f32.mrb[15].mxu0 }
 0x343   : > { %v3516_v32 = vpop.f32.mrb[12].mxu1  ;;  %v3518_v33 = vpop.f32.mrb[16].mxu0 }
 0x344   : > { %v2741_v25 = vpop.f32.mrb[13].mxu1  ;;  %v2747_v26 = vpop.f32.mrb[17].mxu0  ;;  %v1653_v27 = vsel %vm1634_vm3, %v3516_v32, -inf  ;;  %v1656_v34 = vsel %vm1634_vm3, %v3518_v33, -inf }
 0x345   : > { %v1585_v35 = vpop.f32.mrb[14].mxu1  ;;  %1654 = vmax.xlane.f32.xlu1 %v1653_v27  ;;  %1657 = vmax.xlane.f32.xlu0 %v1656_v34  ;;  %v1631_v37 = vpop.f32.mrb[18].mxu0 }
 0x346   : > { %v2742_v38 = vpop.f32.mrb[15].mxu1  ;;  %v2748_v39 = vpop.f32.mrb[19].mxu0 }
 0x356   : > { %965 = vrot.lane.b32.xlu1 %v3346_v13, %s3103_s16 }
 0x35a   : > { %967 = vrot.lane.b32.xlu1 %v3344_v12, %s3103_s16 }
 0x35b   : > { %963 = vrot.lane.b32.xlu0 %v3341_v11, %s3103_s16 }
 0x35e   : > { %969 = vrot.lane.b32.xlu1 %v3354_v15, %s3103_s16 }
 0x3b7   : > { %v1637_v41 = vpop.xlane.xlu0 %1636  ;;  %v1640_v42 = vpop.xlane.xlu1 %1639 }
 0x3b8   : > { %v1659_v43 = vsub.f32 %v1306_v50, %v1637_v41  ;;  %v1660_v44 = vsub.f32 %v1352_v51, %v1640_v42 }
 0x3ba   : > { %v1667_v45 = vmul.f32 1.442695, %v1659_v43  ;;  %v1669_v46 = vmul.f32 1.442695, %v1660_v44 }
 0x3bc   : > { %2898 = vpow2.f32 %v1667_v45 }
 0x3bd   : > { %2900 = vpow2.f32 %v1669_v46 }
 0x3c1   : > { %v1643_v47 = vpop.xlane.xlu0 %1642 }
 0x3c2   : > { %v1661_v13 = vsub.f32 %v1398_v60, %v1643_v47 }
 0x3c4   : > { %v1671_v61 = vmul.f32 1.442695, %v1661_v13 }
 0x3c5   : > { %v1646_v62 = vpop.xlane.xlu0 %1645 }
 0x3c6   : > { %v3532_v12 = vpop.eup %2898  ;;  %2902 = vpow2.f32 %v1671_v61  ;;  %v1662_v11 = vsub.f32 %v1444_v2, %v1646_v62 }
 0x3c7   : > { %v3534_v63 = vpop.eup %2900  ;;  %v1683_v15 = vsel %vm1634_vm3, %v3532_v12, 0.0 }
 0x3c8   : > { %v1673_v1 = vmul.f32 1.442695, %v1662_v11  ;;  %1684 = vadd.xlane.f32.xlu1 %v1683_v15  ;;  %v1686_v48 = vsel %vm1634_vm3, %v3534_v63, 0.0 }
 0x3c9   : > { %1687 = vadd.xlane.f32.xlu0 %v1686_v48 }
 0x3ca   : > { %2904 = vpow2.f32 %v1673_v1  ;;  %v1649_v49 = vpop.xlane.xlu1 %1648  ;;  %v1652_v50 = vpop.xlane.xlu0 %1651 }
 0x3cb   : > { %v1663_v51 = vsub.f32 %v1490_v14, %v1649_v49  ;;  %v1664_v52 = vsub.f32 %v1536_v19, %v1652_v50 }
 0x3cd   : > { %v1675_v53 = vmul.f32 1.442695, %v1663_v51  ;;  %v1677_v54 = vmul.f32 1.442695, %v1664_v52 }
 0x3cf   : > { %2906 = vpow2.f32 %v1675_v53 }
 0x3d0   : > { %v3540_v55 = vpop.eup %2902  ;;  %2908 = vpow2.f32 %v1677_v54 }
 0x3d1   : > { %v1689_v56 = vsel %vm1634_vm3, %v3540_v55, 0.0 }
 0x3d2   : > { %1690 = vadd.xlane.f32.xlu0 %v1689_v56  ;;  %v3544_v57 = vpop.xlane.xlu1 %1654  ;;  %v1658_v59 = vpop.xlane.xlu0 %1657 }
 0x3d3   : > { %v1665_v54 = vsub.f32 %v3516_v32, %v3544_v57 }
 0x3d4   : > { %v3546_v58 = vpop.eup %2904 }
 0x3d5   : > { %v1692_v60 = vsel %vm1634_vm3, %v3546_v58, 0.0  ;;  %v1679_v56 = vmul.f32 1.442695, %v1665_v54 }
 0x3d6   : > { %1693 = vadd.xlane.f32.xlu1 %v1692_v60  ;;  %v966_v2 = vpop.permute.xlu1 %965  ;;  %v964_v6 = vpop.permute.xlu0 %963 }
 0x3d7   : > { %v985_v4 = vcombine.low %v962_v40, %v966_v2  ;;  %v986_v5 = vcombine.high %v962_v40, %v966_v2 }
 0x3d9   : > { %v3550_v3 = vpop.eup %2906  ;;  %v993_v19 = vrot.slane %v985_v4, %v3372_v29  ;;  %v1000_v20 = vrot.slane %v986_v5, %v3372_v29 }
 0x3da   : > { %v968_v7 = vpop.permute.xlu1 %967  ;;  %v1695_v8 = vsel %vm1634_vm3, %v3550_v3, 0.0  ;;  %v3554_v9 = vpop.eup %2908 }
 0x3db   : > { %v1001_v10 = vcombine.low %v964_v6, %v968_v7  ;;  %v1002_v14 = vcombine.high %v964_v6, %v968_v7  ;;  %1696 = vadd.xlane.f32.xlu0 %v1695_v8  ;;  %v1698_v23 = vsel %vm1634_vm3, %v3554_v9, 0.0 }
 0x3dd   : > { %v1009_v21 = vrot.slane %v1001_v10, %v3372_v29  ;;  %v1016_v22 = vrot.slane %v1002_v14, %v3372_v29 }
 0x3df   : > { %v1049_v24 = vcombine.low %v993_v19, %v1009_v21  ;;  %v1050_v28 = vcombine.high %v993_v19, %v1009_v21  ;;  %v1065_v30 = vcombine.low %v1000_v20, %v1016_v22  ;;  %v1066_v31 = vcombine.high %v1000_v20, %v1016_v22  ;;  %1699 = vadd.xlane.f32.xlu0 %v1698_v23 }
 0x3e1   : > { %v1057_v25 = vrot.slane %v1049_v24, %v3374_v36  ;;  %v1064_v26 = vrot.slane %v1050_v28, %v3374_v36  ;;  %v1073_v27 = vrot.slane %v1065_v30, %v3374_v36  ;;  %v1080_v34 = vrot.slane %v1066_v31, %v3374_v36 }
 0x3e3   : > { %v2615_v35 = vcombine.low %v1057_v25, %v1064_v26  ;;  %v2617_v37 = vcombine.high %v1057_v25, %v1064_v26  ;;  %v2619_v38 = vcombine.low %v1073_v27, %v1080_v34  ;;  %v2621_v39 = vcombine.high %v1073_v27, %v1080_v34 }
 0x3e5   : > { %v1129_v40 = vrot.slane %v2615_v35, %v3372_v29  ;;  %v1145_v41 = vrot.slane %v2617_v37, %v3372_v29  ;;  %v1161_v42 = vrot.slane %v2619_v38, %v3372_v29  ;;  %v1177_v43 = vrot.slane %v2621_v39, %v3372_v29 }
 0x3e7   : > { %973 = vrot.lane.b32.xlu1 %v3360_v17, %s3103_s16  ;;  %v1185_v44 = vcombine.low %v1129_v40, %v1145_v41  ;;  %v1217_v45 = vcombine.low %v1161_v42, %v1177_v43  ;;  %v1186_v46 = vcombine.high %v1129_v40, %v1145_v41  ;;  %v1218_v47 = vcombine.high %v1161_v42, %v1177_v43 }
 0x3e9   : > { %v1193_v13 = vrot.slane %v1185_v44, %v3374_v36  ;;  %v1225_v61 = vrot.slane %v1217_v45, %v3374_v36  ;;  %v1200_v62 = vrot.slane %v1186_v46, %v3374_v36  ;;  %v1232_v11 = vrot.slane %v1218_v47, %v3374_v36 }
 0x3eb   : > { %975 = vrot.lane.b32.xlu1 %v3364_v18, %s3103_s16  ;;  %v1249_v15 = vcombine.low %v1193_v13, %v1225_v61  ;;  %v1250_v1 = vcombine.high %v1193_v13, %v1225_v61  ;;  %v1251_v48 = vcombine.low %v1200_v62, %v1232_v11  ;;  %v1252_v49 = vcombine.high %v1200_v62, %v1232_v11 }
 0x3ec   : > { %v1666_v18 = vsub.f32 %v3518_v33, %v1658_v59  ;;  %v970_v33 = vpop.permute.xlu1 %969 }
 0x3ed   : > { %v1257_v17 = vpack.c.bf16 %v1249_v15, %v1249_v15  ;;  %v1258_v50 = vpack.c.bf16 %v1250_v1, %v1250_v1  ;;  %v1259_v8 = vpack.c.bf16 %v1251_v48, %v1251_v48  ;;  %v1260_v14 = vpack.c.bf16 %v1252_v49, %v1252_v49 }
 0x3ee   : > { %v1681_v53 = vmul.f32 1.442695, %v1666_v18 }
 0x3ef   : > { %v1736_v51 = vsel %vm1734_vm4, %v1257_v17, 0  ;;  %v1782_v52 = vsel %vm1734_vm4, %v1258_v50, 0  ;;  %v1828_v22 = vsel %vm1734_vm4, %v1259_v8, 0  ;;  %v1874_v23 = vsel %vm1734_vm4, %v1260_v14, 0 }
 0x3f0   : > { %2750 = vmatpush3.bf16.msra.mxu1 %v1736_v51  ;;  %2756 = vmatpush3.bf16.msra.mxu0 %v1782_v52  ;;  %2910 = vpow2.f32 %v1681_v53 }
 0x3f1   : > { %2761 = vmatprep.subr.bf16.mxu1 %v3093_v0  ;;  %2767 = vmatprep.subr.bf16.mxu0 %v3093_v0  ;;  %2912 = vpow2.f32 %v1679_v56 }
 0x3f5   : > { %971 = vrot.lane.b32.xlu0 %v3358_v16, %s3103_s16 }
 0x3fa   : > { %v3587_v60 = vpop.eup %2910 }
 0x3fb   : > { %v1704_v2 = vsel %vm1634_vm3, %v3587_v60, 0.0  ;;  %v3591_v4 = vpop.eup %2912 }
 0x3fc   : > { %v1701_v16 = vsel %vm1634_vm3, %v3591_v4, 0.0 }
 0x40f   : > { %1705 = vadd.xlane.f32.xlu1 %v1704_v2 }
 0x414   : > { %1702 = vadd.xlane.f32.xlu0 %v1701_v16 }
 0x455   : > { %v1685_v59 = vpop.xlane.xlu1 %1684 }
 0x456   : > { %2914 = vrcp.f32 %v1685_v59  ;;  %v1688_v5 = vpop.xlane.xlu0 %1687 }
 0x457   : > { %2916 = vrcp.f32 %v1688_v5 }
 0x45f   : > { %v1691_v32 = vpop.xlane.xlu0 %1690 }
 0x460   : > { %v2915_v57 = vpop.eup %2914  ;;  %2918 = vrcp.f32 %v1691_v32 }
 0x461   : > { %v2917_v6 = vpop.eup %2916  ;;  %v1715_v7 = vmul.f32 %v2915_v57, %v3532_v12 }
 0x462   : > { %v1716_v10 = vmul.f32 %v2917_v6, %v3534_v63 }
 0x463   : > { %v1694_v19 = vpop.xlane.xlu1 %1693  ;;  %v1723_v20 = vpack.c.bf16 %v1715_v7, %v1715_v7 }
 0x464   : > { %2920 = vrcp.f32 %v1694_v19  ;;  %v1724_v21 = vpack.c.bf16 %v1716_v10, %v1716_v10 }
 0x465   : > { %2752 = vmatmul.mubr.msk.bf16.vlgmr.msra.gmra.mrb[16].mxu1 %vm1634_vm3, %v1723_v20 }
 0x466   : > { %2758 = vmatmul.mubr.msk.bf16.vlgmr.msra.gmra.mrb[20].mxu0 %vm1634_vm3, %v1724_v21  ;;  %2762 = vmatpush3.bf16.msra.mxu1 %v1828_v22 }
 0x467   : > { %2768 = vmatpush3.bf16.msra.mxu0 %v1874_v23  ;;  %2763 = vmatprep.mubr.msk.bf16.mxu1 %vm3094_vm0, %v3093_v0  ;;  %v974_v28 = vpop.permute.xlu1 %973 }
 0x468   : > { %2769 = vmatprep.mubr.msk.bf16.mxu0 %vm3094_vm0, %v3093_v0  ;;  %2773 = vmatprep.subr.bf16.mxu1 %v3093_v0  ;;  %v1697_v12 = vpop.xlane.xlu0 %1696  ;;  %v1017_v27 = vcombine.low %v970_v33, %v974_v28  ;;  %v1018_v34 = vcombine.high %v970_v33, %v974_v28 }
 0x469   : > { %2779 = vmatprep.subr.bf16.mxu0 %v3093_v0  ;;  %2922 = vrcp.f32 %v1697_v12 }
 0x46a   : > { %v2919_v63 = vpop.eup %2918  ;;  %v1032_v41 = vrot.slane %v1018_v34, %v3372_v29 }
 0x46b   : > { %v1717_v24 = vmul.f32 %v2919_v63, %v3540_v55  ;;  %v976_v35 = vpop.permute.xlu1 %975  ;;  %v1025_v55 = vrot.slane %v1017_v27, %v3372_v29 }
 0x46c   : > { %v1700_v30 = vpop.xlane.xlu0 %1699 }
 0x46d   : > { %v1725_v31 = vpack.c.bf16 %v1717_v24, %v1717_v24  ;;  %2924 = vrcp.f32 %v1700_v30 }
 0x46e   : > { %v2921_v25 = vpop.eup %2920 }
 0x46f   : > { %v1718_v26 = vmul.f32 %v2921_v25, %v3546_v58  ;;  %2764 = vmatmul.mubr.msk.bf16.vlgmr.msra.gmra.mrb[20].mxu1 %vm1634_vm3, %v1725_v31 }
 0x470   : > { %2775 = vmatprep.mubr.msk.bf16.mxu1 %vm3094_vm0, %v3093_v0  ;;  %v972_v37 = vpop.permute.xlu0 %971 }
 0x471   : > { %v1726_v38 = vpack.c.bf16 %v1718_v26, %v1718_v26  ;;  %v1033_v39 = vcombine.low %v972_v37, %v976_v35  ;;  %v1034_v40 = vcombine.high %v972_v37, %v976_v35 }
 0x473   : > { %2770 = vmatmul.mubr.msk.bf16.vlgmr.msra.gmra.mrb[24].mxu0 %vm1634_vm3, %v1726_v38  ;;  %v1041_v58 = vrot.slane %v1033_v39, %v3372_v29  ;;  %v1048_v42 = vrot.slane %v1034_v40, %v3372_v29  ;;  %v2923_v56 = vpop.eup %2922 }
 0x474   : > { %2781 = vmatprep.mubr.msk.bf16.mxu0 %vm3094_vm0, %v3093_v0  ;;  %v1719_v8 = vmul.f32 %v2923_v56, %v3550_v3 }
 0x475   : > { %v1081_v43 = vcombine.low %v1025_v55, %v1041_v58  ;;  %v1082_v44 = vcombine.high %v1025_v55, %v1041_v58  ;;  %v1097_v45 = vcombine.low %v1032_v41, %v1048_v42  ;;  %v1098_v46 = vcombine.high %v1032_v41, %v1048_v42 }
 0x476   : > { %v1727_v12 = vpack.c.bf16 %v1719_v8, %v1719_v8 }
 0x477   : > { %v1089_v47 = vrot.slane %v1081_v43, %v3374_v36  ;;  %v1096_v13 = vrot.slane %v1082_v44, %v3374_v36  ;;  %v1105_v61 = vrot.slane %v1097_v45, %v3374_v36  ;;  %v1112_v62 = vrot.slane %v1098_v46, %v3374_v36  ;;  %v2925_v5 = vpop.eup %2924 }
 0x478   : > { %v1720_v10 = vmul.f32 %v2925_v5, %v3554_v9 }
 0x479   : > { %v2616_v11 = vcombine.low %v1089_v47, %v1096_v13  ;;  %v2618_v15 = vcombine.high %v1089_v47, %v1096_v13  ;;  %v2620_v1 = vcombine.low %v1105_v61, %v1112_v62  ;;  %v2622_v48 = vcombine.high %v1105_v61, %v1112_v62 }
 0x47a   : > { %v1728_v63 = vpack.c.bf16 %v1720_v10, %v1720_v10 }
 0x47b   : > { %v1136_v49 = vrot.slane %v2616_v11, %v3372_v29  ;;  %v1152_v17 = vrot.slane %v2618_v15, %v3372_v29  ;;  %v1168_v50 = vrot.slane %v2620_v1, %v3372_v29  ;;  %v1184_v51 = vrot.slane %v2622_v48, %v3372_v29 }
 0x47d   : > { %v1201_v52 = vcombine.low %v1136_v49, %v1152_v17  ;;  %v1233_v18 = vcombine.low %v1168_v50, %v1184_v51  ;;  %v1202_v53 = vcombine.high %v1136_v49, %v1152_v17  ;;  %v1234_v54 = vcombine.high %v1168_v50, %v1184_v51 }
 0x47f   : > { %v1209_v2 = vrot.slane %v1201_v52, %v3374_v36  ;;  %v1241_v16 = vrot.slane %v1233_v18, %v3374_v36  ;;  %v1216_v33 = vrot.slane %v1202_v53, %v3374_v36  ;;  %v1248_v59 = vrot.slane %v1234_v54, %v3374_v36 }
 0x481   : > { %v1253_v32 = vcombine.low %v1209_v2, %v1241_v16  ;;  %v1254_v57 = vcombine.high %v1209_v2, %v1241_v16  ;;  %v1255_v6 = vcombine.low %v1216_v33, %v1248_v59  ;;  %v1256_v7 = vcombine.high %v1216_v33, %v1248_v59 }
 0x483   : > { %v1261_v14 = vpack.c.bf16 %v1253_v32, %v1253_v32  ;;  %v1262_v19 = vpack.c.bf16 %v1254_v57, %v1254_v57  ;;  %v1263_v22 = vpack.c.bf16 %v1255_v6, %v1255_v6  ;;  %v1264_v23 = vpack.c.bf16 %v1256_v7, %v1256_v7 }
 0x485   : > { %v1920_v20 = vsel %vm1734_vm4, %v1261_v14, 0  ;;  %v1966_v21 = vsel %vm1734_vm4, %v1262_v19, 0  ;;  %v2012_v3 = vsel %vm1734_vm4, %v1263_v22, 0  ;;  %v2058_v9 = vsel %vm1734_vm4, %v1264_v23, 0 }
 0x486   : > { %2774 = vmatpush3.bf16.msra.mxu1 %v1920_v20  ;;  %2780 = vmatpush3.bf16.msra.mxu0 %v1966_v21 }
 0x487   : > { %2785 = vmatprep.subr.bf16.mxu1 %v3093_v0  ;;  %2791 = vmatprep.subr.bf16.mxu0 %v3093_v0 }
 0x489   : > { %2776 = vmatmul.mubr.msk.bf16.vlgmr.msra.gmra.mrb[24].mxu1 %vm1634_vm3, %v1727_v12  ;;  %2782 = vmatmul.mubr.msk.bf16.vlgmr.msra.gmra.mrb[28].mxu0 %vm1634_vm3, %v1728_v63 }
 0x48a   : > { %2786 = vmatpush3.bf16.msra.mxu1 %v2012_v3  ;;  %2792 = vmatpush3.bf16.msra.mxu0 %v2058_v9 }
 0x48b   : > { %2793 = vmatprep.mubr.msk.bf16.mxu0 %vm3094_vm0, %v3093_v0  ;;  %2787 = vmatprep.mubr.msk.bf16.mxu1 %vm3094_vm0, %v3093_v0 }
 0x48c   : > { %2797 = vmatprep.subr.bf16.mxu1 %v3093_v0 }
 0x49c   : > { %v1706_v24 = vpop.xlane.xlu1 %1705 }
 0x49d   : > { %2926 = vrcp.f32 %v1706_v24 }
 0x4a1   : > { %v1703_v28 = vpop.xlane.xlu0 %1702 }
 0x4a2   : > { %2928 = vrcp.f32 %v1703_v28 }
 0x4a7   : > { %v2927_v30 = vpop.eup %2926 }
 0x4a8   : > { %v1722_v31 = vmul.f32 %v2927_v30, %v3587_v60 }
 0x4aa   : > { %v1730_v25 = vpack.c.bf16 %v1722_v31, %v1722_v31 }
 0x4ac   : > { %2794 = vmatmul.mubr.msk.bf16.vlgmr.msra.gmra.mrb[32].mxu0 %vm1634_vm3, %v1730_v25  ;;  %v2929_v26 = vpop.eup %2928 }
 0x4ad   : > { %v1721_v27 = vmul.f32 %v2929_v26, %v3591_v4 }
 0x4af   : > { %v1729_v34 = vpack.c.bf16 %v1721_v27, %v1721_v27 }
 0x4b1   : > { %2788 = vmatmul.mubr.msk.bf16.vlgmr.msra.gmra.mrb[28].mxu1 %vm1634_vm3, %v1729_v34 }
 0x4b2   : > { %2801 = vmatprep.mubr.msk.bf16.mxu1 %vm3094_vm0, %v3093_v0 }
 0x538   : > { %v1772_v35 = vpop.f32.mrb[16].mxu1 }
 0x539   : > { %v1818_v37 = vpop.f32.mrb[20].mxu0  ;;  %v2753_v38 = vpop.f32.mrb[17].mxu1 }
 0x53a   : > { %v2759_v39 = vpop.f32.mrb[21].mxu0  ;;  %v1775_v40 = vpop.f32.mrb[18].mxu1 }
 0x53b   : > { %v1821_v55 = vpop.f32.mrb[22].mxu0  ;;  %v2754_v41 = vpop.f32.mrb[19].mxu1 }
 0x53c   : > { %v2760_v60 = vpop.f32.mrb[23].mxu0 }
 0x542   : > { %v1864_v58 = vpop.f32.mrb[20].mxu1 }
 0x543   : > { %v2100_v42 = vcombine.low %v1772_v35, %v1864_v58  ;;  %v2101_v43 = vcombine.high %v1772_v35, %v1864_v58  ;;  %v2765_v44 = vpop.f32.mrb[21].mxu1 }
 0x544   : > { %v1867_v45 = vpop.f32.mrb[22].mxu1 }
 0x545   : > { %v2766_v4 = vpop.f32.mrb[23].mxu1  ;;  %v2108_v11 = vrot.slane %v2100_v42, %v3372_v29  ;;  %v2115_v15 = vrot.slane %v2101_v43, %v3372_v29 }
 0x546   : > { %v1910_v46 = vpop.f32.mrb[24].mxu0 }
 0x547   : > { %v2116_v47 = vcombine.low %v1818_v37, %v1910_v46  ;;  %v2117_v13 = vcombine.high %v1818_v37, %v1910_v46  ;;  %v2771_v61 = vpop.f32.mrb[25].mxu0 }
 0x548   : > { %v1913_v62 = vpop.f32.mrb[26].mxu0 }
 0x549   : > { %v2124_v1 = vrot.slane %v2116_v47, %v3372_v29  ;;  %v2131_v48 = vrot.slane %v2117_v13, %v3372_v29  ;;  %v2772_v49 = vpop.f32.mrb[27].mxu0 }
 0x54b   : > { %v2164_v17 = vcombine.low %v2108_v11, %v2124_v1  ;;  %v2165_v50 = vcombine.high %v2108_v11, %v2124_v1  ;;  %v2180_v51 = vcombine.low %v2115_v15, %v2131_v48  ;;  %v2181_v52 = vcombine.high %v2115_v15, %v2131_v48  ;;  %v2896_v11 = vld [vmem:[#allocation7] sm:$0xff]  }
 0x54c   : > { %2798 = vmatpush3.bf16.msra.mxu1 %v2896_v11 }
 0x54d   : > { %v2172_v18 = vrot.slane %v2164_v17, %v3374_v36  ;;  %v2179_v53 = vrot.slane %v2165_v50, %v3374_v36  ;;  %v2188_v54 = vrot.slane %v2180_v51, %v3374_v36  ;;  %v2195_v56 = vrot.slane %v2181_v52, %v3374_v36  ;;  %2799 = vmatprep.subr.bf16.mxu1 %v3093_v0 }
 0x54f   : > { %v2639_v2 = vcombine.low %v2172_v18, %v2179_v53  ;;  %v2641_v16 = vcombine.high %v2172_v18, %v2179_v53  ;;  %v2643_v33 = vcombine.low %v2188_v54, %v2195_v56  ;;  %v2645_v59 = vcombine.high %v2188_v54, %v2195_v56 }
 0x551   : > { %v2244_v5 = vrot.slane %v2639_v2, %v3372_v29  ;;  %v2260_v32 = vrot.slane %v2641_v16, %v3372_v29  ;;  %v2276_v57 = vrot.slane %v2643_v33, %v3372_v29  ;;  %v2292_v6 = vrot.slane %v2645_v59, %v3372_v29  ;;  %v2897_v2 = vld [vmem:[#allocation7 + $0x8] sm:$0xff]  }
 0x552   : > { %2800 = vmatpush3.bf16.msra.mxu1 %v2897_v2 }
 0x553   : > { %v2301_v7 = vcombine.high %v2244_v5, %v2260_v32  ;;  %v2333_v8 = vcombine.high %v2276_v57, %v2292_v6  ;;  %v2300_v10 = vcombine.low %v2244_v5, %v2260_v32  ;;  %v2332_v14 = vcombine.low %v2276_v57, %v2292_v6 }
 0x555   : > { %v2315_v19 = vrot.slane %v2301_v7, %v3374_v36  ;;  %v2347_v20 = vrot.slane %v2333_v8, %v3374_v36  ;;  %v3667_v21 = vrot.slane %v2300_v10, %v3374_v36  ;;  %v3670_v22 = vrot.slane %v2332_v14, %v3374_v36 }
 0x557   : > { %v2366_v23 = vcombine.low %v2315_v19, %v2347_v20  ;;  %v2365_v12 = vcombine.high %v3667_v21, %v3670_v22  ;;  %v2367_v63 = vcombine.high %v2315_v19, %v2347_v20  ;;  %v2364_v3 = vcombine.low %v3667_v21, %v3670_v22 }
 0x559   : > { %2377 = vrot.lane.b32.xlu1 %v2366_v23, %s3106_s9  ;;  %2373 = vrot.lane.b32.xlu0 %v2365_v12, %s3107_s29  ;;  %s3708_s9 = scalar_lea.hbm %s3758_s5, %s2652_s7  ;;  %s3113_s29 = smov [#allocation8]  }
 0x55c   : > { %v1956_v9 = vpop.f32.mrb[24].mxu1  ;;  %v2002_v24 = vpop.f32.mrb[28].mxu0 }
 0x55d   : > { %2381 = vrot.lane.b32.xlu0 %v2367_v63, %s3108_s17  ;;  %v2777_v28 = vpop.f32.mrb[25].mxu1  ;;  %v2783_v30 = vpop.f32.mrb[29].mxu0  ;;  %s3020_s17 = sshll.u32 %s3113_s29, 4  ;;  %s3021_s17 = int_to_ptr.vmem [resolvable:$false] %s3020_s17 }
 0x55e   : > { %v1959_v31 = vpop.f32.mrb[26].mxu1  ;;  %v2005_v25 = vpop.f32.mrb[30].mxu0  ;;  %p3023_p7 = scmp.lt.s32.totalorder %s3710_s30, %s3021_s17 }
 0x55f   : > { %v2778_v26 = vpop.f32.mrb[27].mxu1  ;;  %v2784_v27 = vpop.f32.mrb[31].mxu0  ;;  %v2647_v25 = vld [vmem:[%s3757_s4] ss:$0 sm:$0xff] }
 0x57f   : > { %v2094_v34 = vpop.f32.mrb[32].mxu0 }
 0x580   : > { %v2148_v35 = vcombine.low %v2002_v24, %v2094_v34  ;;  %v2149_v37 = vcombine.high %v2002_v24, %v2094_v34  ;;  %v2795_v38 = vpop.f32.mrb[33].mxu0 }
 0x581   : > { %v2097_v39 = vpop.f32.mrb[34].mxu0 }
 0x582   : > { %v2796_v40 = vpop.f32.mrb[35].mxu0  ;;  %v2156_v43 = vrot.slane %v2148_v35, %v3372_v29  ;;  %v2163_v44 = vrot.slane %v2149_v37, %v3372_v29 }
 0x584   : > { %v2048_v55 = vpop.f32.mrb[28].mxu1 }
 0x585   : > { %v2132_v41 = vcombine.low %v1956_v9, %v2048_v55  ;;  %v2133_v60 = vcombine.high %v1956_v9, %v2048_v55  ;;  %v2789_v58 = vpop.f32.mrb[29].mxu1 }
 0x586   : > { %v2051_v42 = vpop.f32.mrb[30].mxu1 }
 0x587   : > { %v2140_v45 = vrot.slane %v2132_v41, %v3372_v29  ;;  %v2147_v4 = vrot.slane %v2133_v60, %v3372_v29  ;;  %v2790_v46 = vpop.f32.mrb[31].mxu1 }
 0x589   : > { %v2196_v47 = vcombine.low %v2140_v45, %v2156_v43  ;;  %v2197_v13 = vcombine.high %v2140_v45, %v2156_v43  ;;  %v2212_v61 = vcombine.low %v2147_v4, %v2163_v44  ;;  %v2213_v62 = vcombine.high %v2147_v4, %v2163_v44 }
 0x58b   : > { %v2204_v15 = vrot.slane %v2196_v47, %v3374_v36  ;;  %v2211_v1 = vrot.slane %v2197_v13, %v3374_v36  ;;  %v2220_v48 = vrot.slane %v2212_v61, %v3374_v36  ;;  %v2227_v49 = vrot.slane %v2213_v62, %v3374_v36 }
 0x58d   : > { %v2640_v17 = vcombine.low %v2204_v15, %v2211_v1  ;;  %v2642_v50 = vcombine.high %v2204_v15, %v2211_v1  ;;  %v2644_v51 = vcombine.low %v2220_v48, %v2227_v49  ;;  %v2646_v52 = vcombine.high %v2220_v48, %v2227_v49 }
 0x58f   : > { %v2251_v18 = vrot.slane %v2640_v17, %v3372_v29  ;;  %v2267_v53 = vrot.slane %v2642_v50, %v3372_v29  ;;  %v2283_v54 = vrot.slane %v2644_v51, %v3372_v29  ;;  %v2299_v56 = vrot.slane %v2646_v52, %v3372_v29 }
 0x591   : > { %v2316_v16 = vcombine.low %v2251_v18, %v2267_v53  ;;  %v2348_v33 = vcombine.low %v2283_v54, %v2299_v56  ;;  %v2317_v59 = vcombine.high %v2251_v18, %v2267_v53  ;;  %v2349_v5 = vcombine.high %v2283_v54, %v2299_v56 }
 0x593   : > { %v2324_v32 = vrot.slane %v2316_v16, %v3374_v36  ;;  %v2356_v57 = vrot.slane %v2348_v33, %v3374_v36  ;;  %v2331_v0 = vrot.slane %v2317_v59, %v3374_v36  ;;  %v2363_v6 = vrot.slane %v2349_v5, %v3374_v36 }
 0x595   : > { %v2369_v7 = vcombine.high %v2324_v32, %v2356_v57  ;;  %v2368_v8 = vcombine.low %v2324_v32, %v2356_v57  ;;  %v2371_v10 = vcombine.high %v2331_v0, %v2363_v6  ;;  %v2370_v14 = vcombine.low %v2331_v0, %v2363_v6 }
 0x597   : > { %2389 = vrot.lane.b32.xlu0 %v2369_v7, %s3109_s24  ;;  %2385 = vrot.lane.b32.xlu1 %v2368_v8, %s3110_s26  ;;  %s3022_s24 = scalar_lea.vmem %s3021_s17, 256 }
 0x598   : > { %p3024_p9 = scmp.lt.s32.totalorder %s3022_s24, %s3016_s13 }
 0x59a   : > { %p3025_p12 = por %p3024_p9, %p3023_p7 }
 0x59b   : > { %2397 = vrot.lane.b32.xlu0 %v2371_v10, %s3111_s8  ;;  %2393 = vrot.lane.b32.xlu1 %v2370_v14, %s3112_s10 }
 0x59c   : > { %p3026_p2 = pnand %p3025_p12, %p3019_p3 }
 0x5cb   : > { %v2374_v29 = vpop.permute.xlu0 %2373  ;;  %v2378_v19 = vpop.permute.xlu1 %2377 }
 0x5cc   : > { %v2400_v20 = vsel %vm1265_vm2, %v2364_v3, %v2374_v29 }
 0x5cd   : > { %v2401_v23 = vsel %vm1634_vm3, %v2400_v20, %v2378_v19 }
 0x5cf   : > { %v2382_v36 = vpop.permute.xlu0 %2381 }
 0x5d0   : > { %v2403_v12 = vsel %vm2402_vm5, %v2401_v23, %v2382_v36 }
 0x609   : > { %v2390_v63 = vpop.permute.xlu0 %2389  ;;  %v2386_v9 = vpop.permute.xlu1 %2385 }
 0x60a   : > { %v2405_v24 = vsel %vm2404_vm6, %v2403_v12, %v2386_v9 }
 0x60b   : > { %v2407_v30 = vsel %vm2406_vm7, %v2405_v24, %v2390_v63 }
 0x60d   : > { %v2398_v28 = vpop.permute.xlu0 %2397  ;;  %v2394_v31 = vpop.permute.xlu1 %2393 }
 0x60e   : > { %v2409_v21 = vsel %vm2408_vm8, %v2407_v30, %v2394_v31 }
 0x60f   : > { %v2411_v22 = vsel %vm2410_vm9, %v2409_v21, %v2398_v28 }
 0x610   : > { %v2412_v3 = vpack.c.bf16 %v2411_v22, %v2411_v22 }
 0x612   : > { %2802 = vmatmul.mubr.msk.bf16.vlgmr.msra.gmra.mrb[32].mxu1 %vm295_vm1, %v2412_v3 }
 0x6e5   : > { %v2473_v26 = vpop.f32.mrb[32].mxu1 }
 0x6e6   : > { %v2474_v27 = vadd.f32 %v2647_v25, %v2473_v26  ;;  %v2803_v34 = vpop.f32.mrb[33].mxu1 }
 0x6e7   : > { %v2476_v35 = vpop.f32.mrb[34].mxu1 }
 0x6e8   : > { %v2804_v37 = vpop.f32.mrb[35].mxu1  ;;  %2479 = vst.msk [vmem:[%s268_s6] sm:$0xff] %vm295_vm1, %v2474_v27 }
 0x6e9   : > { %3029 = shalt.err (!%p3026_p2)
}
 0x6ea   : > { %s3030_s12 = scalar_lea.hbm %s3708_s9, 128  ;;  %s3034_s10 = scalar_lea.hbm %s3758_s5, 256 }
 0x6eb   : > { %p3031_p13 = scmp.ne.s32.totalorder %s3708_s9, %s3030_s12  ;;  %p3035_p4 = scmp.lt.u32.totalorder %s3708_s9, %s3758_s5 }
 0x6ec   : > { %p3036_p5 = scmp.lt.u32.totalorder %s3034_s10, %s3030_s12  ;;  %p3038_p11 = scmp.lt.u32.totalorder %s3030_s12, %s3708_s9 }
 0x6ed   : > { %p3032_p6 = pnand %p3031_p13, %p3772_p0 }
 0x6ee   : > { %p3037_p8 = por %p3036_p5, %p3035_p4 }
 0x6ef   : > { %p3033_p10 = pneg %p3032_p6 }
 0x6f0   : > { %p3039_p1 = por %p3038_p11, %p3037_p8 }
 0x6f2   : > { %p3040_p3 = pnand %p3039_p1, %p3033_p10 }
 0x6f4   : > { %3043 = shalt.err (!%p3040_p3)
}
 0x6f5   : > { %2815 = dma.vmem_to_hbm [thread:$0]  (%p3772_p0), %s3710_s30, 128, %s3708_s9, %s2481_s22  }
 0x6f6 PF: > { %s2506_s7 = sand.u32 1, %s3074_s18   ;;  %p3773_p7 = scmp.ne.s32.totalorder %s3763_s25, 0 }
 0x6f7   : > { %p3774_p9 = scmp.ge.s32.totalorder %s3086_s21, 2  ;;  %s2507_s6 = scalar_lea.sflag [#allocation4], %s2506_s7 }
 0x6f9   : > { %p2829_p12 = pnand %p3774_p9, %p3773_p7 }
 0x6fb   : > { %3069 = dma.done.wait (!%p2829_p12), %s2507_s6, 128  }
 0x6fc   : > { %3071 = vsyncadd (!%p2829_p12), %s2507_s6, 4294967168  ;;  %p19_p2 = scmp.ge.s32.totalorder %s3254_s14, 4   ;;  %s3775_s18 = smov %s3078_s19 }
 0x6fd   : > { %s3776_s19 = smov %s3082_s20  ;;  %s3777_s20 = smov %s3270_s27 }
 0x6fe   : > { %s3778_s21 = smov %s3254_s14  ;;  %21 = sbr.rel (!%p19_p2) target bundleno = 6 (0x6), region = 93 }
 0x705   :  { %2512 = vsyncpa [#allocation3], 1 }
 0x706   :  { %2514 = vsyncpa [#allocation3 + $0x1], 1 }
 0x707   :  { %2515 = vsyncpa [#allocation6], 1 }
 0x708   :  { %2516 = vsyncpa [#allocation4], 1 }
 0x709   :  { %2518 = vsyncpa [#allocation4 + $0x1], 1 }

</bundles_post_ra>
